<compile_context>
chip_gen: v5e
topology: v5e:2x2
jax: 0.10.0
libtpu: 0.0.40
codegen_flags: <defaults>
</compile_context>

<pallas_src>
import math
import functools

import jax
import jax.numpy as jnp
import numpy as np
from jax import lax
from jax.experimental import pallas as pl
from jax.experimental.pallas import tpu as pltpu


# ------------------------------ helpers ------------------------------
def _round_up(x, m):
    return (x + m - 1) // m * m


def _pad_to(a, shape):
    pads = [(0, t - s) for s, t in zip(a.shape, shape)]
    if any(p[1] for p in pads):
        a = jnp.pad(a, pads)
    return a


# ------------------------------ kernel ------------------------------
def _ulinear_kernel(x_ref, w_ref, mi_ref, s12_ref, mo_ref, ao_ref, b_ref,
                    o_ref, acc_ref, *, bk, precision):
    k = pl.program_id(2)

    @pl.when(k == 0)
    def _init():
        acc_ref[...] = jnp.zeros_like(acc_ref)

    x = x_ref[...]                                       # (bm, bk) compute dtype
    k0 = pl.multiple_of(k * bk, bk)                      # aligned slice into resident mi
    mi = mi_ref[:, pl.ds(k0, bk)]                        # (1, bk) f32 (resident block)
    xs = x * mi.astype(x.dtype)                          # scale in compute dtype (bf16 VALU on v6e/v7x)

    # Main GEMM: contract last dims of xs (bm,bk) and W (bn,bk) -> (bm,bn); native
    # MXU mapping, no in-kernel transpose, f32 accumulation.
    acc_ref[...] += lax.dot_general(
        xs, w_ref[...],
        dimension_numbers=(((1,), (1,)), ((), ())),
        preferred_element_type=jnp.float32,
        precision=precision)

    @pl.when(k == pl.num_programs(2) - 1)
    def _finalize():
        s1 = s12_ref[:, 0:1]                             # (bm,1) f32  sum_i x*mi
        s2 = s12_ref[:, 1:2]                             # (bm,1) f32  sum_i x*ai
        y = (acc_ref[...] * mo_ref[...]                  # (bm,bn) * (1,bn)
             + ao_ref[...] * s1                          # (1,bn)  * (bm,1)
             + s2                                        # (bm,1)
             + b_ref[...])                               # (1,bn)
        o_ref[...] = y.astype(o_ref.dtype)


# ------------------------------ wrapper ------------------------------
def ulinear_forward(x, weight, mi, ai, mo, ao, bias, *,
                    bm=512, bn=512, bk=None, precision=None):
    """y = x @ W_eff.T + b_eff, fused (W_eff never materialized)."""
    lead = x.shape[:-1]
    K = x.shape[-1]
    N, K_w = weight.shape
    assert K_w == K, "weight must be (out_features, in_features)"

    x2 = x.reshape(-1, K)
    M = x2.shape[0]
    f32 = jnp.float32

    ib = jnp.dtype(x2.dtype).itemsize
    wb = jnp.dtype(weight.dtype).itemsize
    ob = jnp.dtype(x.dtype).itemsize

    # Tile sizes: (8,128)-aligned (16 sublanes for 2-byte dtypes); ragged dims are
    # zero-padded up to the tile so all stores stay lane-dense.
    sub = {4: 8, 2: 16, 1: 32}.get(ib, 8)
    if bk is None:
        bk = 1024 if ib <= 2 else 512
    bm = _round_up(min(M, bm), sub)
    bn = _round_up(min(N, bn), 128)
    bk = _round_up(min(K, bk), 128)
    Mp, Np, Kp = _round_up(M, bm), _round_up(N, bn), _round_up(K, bk)

    # Rank-1 side terms as one fused, tiny (M,2) GEMV in XLA (single extra pass
    # over x) -> the kernel never recomputes them per N tile and the hoist is
    # megacore-safe (v7x).
    miai = jnp.stack([mi.astype(f32), ai.astype(f32)], axis=-1)      # (K, 2)
    s12 = jnp.dot(x2, miai, precision=lax.Precision.HIGHEST,
                  preferred_element_type=f32)                        # (M, 2)

    # TODO(synk): for a long-lived layer, the padding of weight/mi/mo/ao/b could be
    # hoisted to parameter-setup time; it is a no-op for aligned shapes anyway.
    x2p = _pad_to(x2, (Mp, Kp))
    wp = _pad_to(weight, (Np, Kp))
    s12p = _pad_to(s12, (Mp, 2))
    mi2 = _pad_to(mi.reshape(1, K).astype(f32), (1, Kp))
    mo2 = _pad_to(mo.reshape(1, N).astype(f32), (1, Np))
    ao2 = _pad_to(ao.reshape(1, N).astype(f32), (1, Np))
    b2 = _pad_to(bias.reshape(1, N).astype(f32), (1, Np))

    gm, gn, gk = Mp // bm, Np // bn, Kp // bk

    # Explicit VMEM budget: double-buffered blocks + accumulator + resident vectors
    # + in-kernel temporaries; floor at the usual 32 MiB scoped default, cap at
    # 64 MiB so it never exceeds v7x's per-TC VMEM.
    vmem_need = (2 * bm * bk * ib          # x blocks
                 + 2 * bn * bk * wb        # W blocks
                 + 2 * bm * bn * ob        # output blocks
                 + bm * bn * 4             # f32 accumulator
                 + Kp * 4                  # resident mi
                 + 2 * bm * 128 * 4        # s12 (lane-padded)
                 + 8 * bn * 4              # mo / ao / b
                 + 2 * bm * bk * max(ib, wb))   # xs and friends
    vmem_limit = int(min(64 * 1024 * 1024, max(32 * 1024 * 1024, 2 * vmem_need)))

    flops = 2 * Mp * Np * Kp + Mp * Kp * gn + 5 * Mp * Np + 4 * Mp * Kp
    bytes_accessed = (Mp * Kp * ib * (gn + 1)     # x re-read per N tile + GEMV pass
                      + Np * Kp * wb * gm         # W re-read per M tile
                      + Mp * Np * ob              # output
                      + Mp * 2 * 4 + Kp * 4 + 3 * Np * 4)

    kernel = functools.partial(_ulinear_kernel, bk=bk, precision=precision)

    y = pl.pallas_call(
        kernel,
        out_shape=jax.ShapeDtypeStruct((Mp, Np), x.dtype),
        grid_spec=pltpu.PrefetchScalarGridSpec(
            num_scalar_prefetch=0,
            grid=(gm, gn, gk),                                   # K (reduction) innermost
            in_specs=[
                pl.BlockSpec((bm, bk), lambda i, j, k: (i, k)),  # x rows x K-slice
                pl.BlockSpec((bn, bk), lambda i, j, k: (j, k)),  # W N-slice x K-slice
                pl.BlockSpec((1, Kp), lambda i, j, k: (0, 0)),   # mi (resident, sliced in-kernel)
                pl.BlockSpec((bm, 2), lambda i, j, k: (i, 0)),   # s1/s2 per M tile
                pl.BlockSpec((1, bn), lambda i, j, k: (0, j)),   # mo
                pl.BlockSpec((1, bn), lambda i, j, k: (0, j)),   # ao
                pl.BlockSpec((1, bn), lambda i, j, k: (0, j)),   # bias
            ],
            out_specs=pl.BlockSpec((bm, bn), lambda i, j, k: (i, j)),
            scratch_shapes=[
                pltpu.VMEM((bm, bn), jnp.float32),               # f32 GEMM accumulator
            ],
        ),
        compiler_params=pltpu.CompilerParams(
            dimension_semantics=("parallel", "parallel", "arbitrary"),
            vmem_limit_bytes=vmem_limit),
        cost_estimate=pl.CostEstimate(
            flops=flops, transcendentals=0, bytes_accessed=bytes_accessed),
    )(x2p, wp, mi2, s12p, mo2, ao2, b2)

    return y[:M, :N].reshape(*lead, N)


def ulinear_apply(params, x, **kwargs):
    """Apply ULinear. Disabled terms (None params) fall back to identity values,
    exactly reproducing the module's flag behaviour."""
    N, K = params["weight"].shape
    dt = jnp.float32

    def get(name, default):
        v = params.get(name)
        return default if v is None else v

    # Tiny O(In)+O(Out) vector+scalar adds -> plain XLA (no kernel needed).
    mo = get("mbias", jnp.ones((N,), dt)) + get("mbias_bias", jnp.zeros((1,), dt))
    ao = get("ambias", jnp.zeros((N,), dt)) + get("ambias_bias", jnp.zeros((1,), dt))
    mi = get("imbias", jnp.ones((K,), dt)) + get("imbias_bias", jnp.zeros((1,), dt))
    ai = get("iambias", jnp.zeros((K,), dt)) + get("iambias_bias", jnp.zeros((1,), dt))
    b = get("bias", jnp.zeros((N,), dt)) + get("bias_bias", jnp.zeros((1,), dt))
    return ulinear_forward(x, params["weight"], mi, ai, mo, ao, b, **kwargs)


# ------------------------------ parameter init ------------------------------
def init_params(key, in_features, out_features, dtype=jnp.float32):
    k_w, k_b = jax.random.split(key)
    bound = 1.0 / math.sqrt(in_features)      # kaiming_uniform_(a=sqrt(5)) on (Out,In)
    return dict(
        weight=jax.random.uniform(k_w, (out_features, in_features), dtype, -bound, bound),
        bias=jax.random.uniform(k_b, (out_features,), dtype, -bound, bound),
        bias_bias=jnp.zeros((1,), dtype),
        mbias=jnp.ones((out_features,), dtype), mbias_bias=jnp.zeros((1,), dtype),
        imbias=jnp.ones((in_features,), dtype), imbias_bias=jnp.zeros((1,), dtype),
        ambias=jnp.zeros((out_features,), dtype), ambias_bias=jnp.zeros((1,), dtype),
        iambias=jnp.zeros((in_features,), dtype), iambias_bias=jnp.zeros((1,), dtype),
    )


# ------------------------------ reference (mirrors torch forward) ------------------------------
def torch_reference(params, x):
    p = {k: np.asarray(v, np.float32) for k, v in params.items()}
    w = p["weight"]
    bias = p["bias"] + p["bias_bias"]
    wt = w.T
    wt = wt * (p["mbias"] + p["mbias_bias"])
    wt = wt + (p["ambias"] + p["ambias_bias"])
    w_eff = wt.T
    w_eff = w_eff * (p["imbias"] + p["imbias_bias"])
    w_eff = w_eff + (p["iambias"] + p["iambias_bias"])
    x2 = np.asarray(x, np.float32).reshape(-1, w.shape[1])
    y = x2 @ w_eff.T + bias
    return y.reshape(*np.asarray(x).shape[:-1], w.shape[0])


# NOTE: the PyTorch module's cached_weights / backward-hook cache-clearing is a
# training-time memoization of W_eff; it does not change the forward math.
# TODO(synk): no Pallas equivalent needed for the cache — fusion makes W_eff implicit.


if __name__ == "__main__":
    key = jax.random.PRNGKey(0)
    keys = jax.random.split(key, 8)

    # ---- test 1: 256 -> 256, small tiles so the M/N tiling and K-accumulation
    #              paths of the kernel are actually exercised at demo size ----
    batch, seq = 2, 8
    in_features, out_features = 256, 256
    params = init_params(keys[0], in_features, out_features)
    # perturb the u-parameters so every term of the forward is numerically exercised
    params["mbias"] = params["mbias"] + 0.1 * jax.random.normal(keys[1], (out_features,))
    params["imbias"] = params["imbias"] + 0.1 * jax.random.normal(keys[2], (in_features,))
    params["ambias"] = 0.05 * jax.random.normal(keys[3], (out_features,))
    params["iambias"] = 0.05 * jax.random.normal(keys[4], (in_features,))
    params["mbias_bias"] = jnp.array([0.03], jnp.float32)
    params["imbias_bias"] = jnp.array([-0.02], jnp.float32)
    params["ambias_bias"] = jnp.array([-0.01], jnp.float32)
    params["iambias_bias"] = jnp.array([0.015], jnp.float32)
    params["bias_bias"] = jnp.array([0.02], jnp.float32)

    x = jax.random.normal(keys[5], (batch, seq, in_features), jnp.float32)
    fwd = jax.jit(lambda xx: ulinear_apply(params, xx, bm=8, bn=128, bk=128))
    y = jax.block_until_ready(fwd(x))

    # Tolerance covers the MXU's bf16-class default f32 matmul precision and the
    # (x*mi)@W.T refactoring; precision=HIGHEST tightens this to ~1e-6.
    np.testing.assert_allclose(np.asarray(y), torch_reference(params, x),
                               rtol=3e-2, atol=3e-2)

    # also run once with the production-default tile sizes (single-tile grid here)
    y_def = jax.block_until_ready(jax.jit(lambda xx: ulinear_apply(params, xx))(x))
    np.testing.assert_allclose(np.asarray(y_def), torch_reference(params, x),
                               rtol=3e-2, atol=3e-2)

    # ---- test 2: ragged shapes (M=15, K=96, N=160) -> exercises the padding path ----
    in2, out2 = 96, 160
    params2 = init_params(keys[6], in2, out2)
    params2["ambias"] = 0.05 * jnp.ones((out2,), jnp.float32)
    params2["iambias"] = 0.05 * jnp.ones((in2,), jnp.float32)
    x2 = jax.random.normal(keys[7], (3, 5, in2), jnp.float32)
    y2 = jax.block_until_ready(jax.jit(lambda xx: ulinear_apply(params2, xx))(x2))
    np.testing.assert_allclose(np.asarray(y2), torch_reference(params2, x2),
                               rtol=3e-2, atol=3e-2)

    print("KERNEL_OK")
</pallas_src>

<mosaic_0001>
module attributes {stable_mosaic.version = 11 : i64} {
  func.func @_ulinear_kernel(%arg0: i32, %arg1: i32, %arg2: i32, %arg3: memref<8x128xf32, #tpu.memory_space<vmem>>, %arg4: memref<128x128xf32, #tpu.memory_space<vmem>>, %arg5: memref<1x256xf32, #tpu.memory_space<vmem>>, %arg6: memref<8x2xf32, #tpu.memory_space<vmem>>, %arg7: memref<1x128xf32, #tpu.memory_space<vmem>>, %arg8: memref<1x128xf32, #tpu.memory_space<vmem>>, %arg9: memref<1x128xf32, #tpu.memory_space<vmem>>, %arg10: memref<8x128xf32, #tpu.memory_space<vmem>>, %arg11: memref<8x128xf32, #tpu.memory_space<vmem>>) attributes {dimension_semantics = [#tpu.dimension_semantics<parallel>, #tpu.dimension_semantics<parallel>, #tpu.dimension_semantics<arbitrary>], iteration_bounds = array<i64: 2, 2, 2>, scalar_prefetch = 0 : i64, scratch_operands = 1 : i64, tpu.core_type = #tpu.core_type<tc>, window_params = [{transform_indices = @transform_0, window_bounds = array<i64: 8, 128>}, {transform_indices = @transform_1, window_bounds = array<i64: 128, 128>}, {pipeline_mode = #tpu.pipeline_mode<synchronous>, transform_indices = @transform_2, window_bounds = array<i64: 1, 256>}, {transform_indices = @transform_3, window_bounds = array<i64: 8, 2>}, {transform_indices = @transform_4, window_bounds = array<i64: 1, 128>}, {transform_indices = @transform_5, window_bounds = array<i64: 1, 128>}, {transform_indices = @transform_6, window_bounds = array<i64: 1, 128>}, {transform_indices = @transform_7, window_bounds = array<i64: 8, 128>}]} {
    %c0_i32 = arith.constant 0 : i32
    %0 = arith.cmpi eq, %arg2, %c0_i32 : i32
    %1 = arith.extui %0 : i1 to i32
    %c0_i32_0 = arith.constant 0 : i32
    %2 = arith.cmpi ne, %1, %c0_i32_0 : i32
    scf.if %2 {
      %cst_10 = arith.constant 0.000000e+00 : f32
      %18 = vector.broadcast %cst_10 : f32 to vector<8x128xf32>
      %c0_11 = arith.constant 0 : index
      %c0_12 = arith.constant 0 : index
      %19 = vector.load %arg11[%c0_11, %c0_12] : memref<8x128xf32, #tpu.memory_space<vmem>>, vector<8x128xf32>
      tpu.vector_store %arg11[%c0_11, %c0_12], %18 {strides = array<i32>} : memref<8x128xf32, #tpu.memory_space<vmem>>, vector<8x128xf32>,
    } else {
    }
    %c0 = arith.constant 0 : index
    %c0_1 = arith.constant 0 : index
    %3 = vector.load %arg3[%c0, %c0_1] : memref<8x128xf32, #tpu.memory_space<vmem>>, vector<8x128xf32>
    %c128_i32 = arith.constant 128 : i32
    %4 = arith.muli %arg2, %c128_i32 : i32
    %5 = tpu.assume_multiple %4, 128 : i32
    %c0_2 = arith.constant 0 : index
    %6 = arith.index_cast %5 : i32 to index
    %7 = vector.load %arg5[%c0_2, %6] : memref<1x256xf32, #tpu.memory_space<vmem>>, vector<1x128xf32>
    %8 = vector.broadcast %7 : vector<1x128xf32> to vector<8x128xf32>
    %9 = arith.mulf %3, %8 : vector<8x128xf32>
    %c0_3 = arith.constant 0 : index
    %c0_4 = arith.constant 0 : index
    %10 = vector.load %arg11[%c0_3, %c0_4] : memref<8x128xf32, #tpu.memory_space<vmem>>, vector<8x128xf32>
    %c0_5 = arith.constant 0 : index
    %c0_6 = arith.constant 0 : index
    %11 = vector.load %arg4[%c0_5, %c0_6] : memref<128x128xf32, #tpu.memory_space<vmem>>, vector<128x128xf32>
    %cst = arith.constant dense<0.000000e+00> : vector<8x128xf32>
    %12 = tpu.matmul %9, %11, %cst {dimension_numbers = #tpu.dot_dimension_numbers<[1], [1], [0], [0], [0, 0, 1, 0], [], []>} : vector<8x128xf32>, vector<128x128xf32>, vector<8x128xf32> -> vector<8x128xf32>
    %13 = arith.addf %10, %12 : vector<8x128xf32>
    %c0_7 = arith.constant 0 : index
    %c0_8 = arith.constant 0 : index
    %14 = vector.load %arg11[%c0_7, %c0_8] : memref<8x128xf32, #tpu.memory_space<vmem>>, vector<8x128xf32>
    tpu.vector_store %arg11[%c0_7, %c0_8], %13 {strides = array<i32>} : memref<8x128xf32, #tpu.memory_space<vmem>>, vector<8x128xf32>,
    %c1_i32 = arith.constant 1 : i32
    %15 = arith.cmpi eq, %arg2, %c1_i32 : i32
    %16 = arith.extui %15 : i1 to i32
    %c0_i32_9 = arith.constant 0 : i32
    %17 = arith.cmpi ne, %16, %c0_i32_9 : i32
    scf.if %17 {
      %c0_10 = arith.constant 0 : index
      %c0_11 = arith.constant 0 : index
      %18 = vector.load %arg6[%c0_10, %c0_11] : memref<8x2xf32, #tpu.memory_space<vmem>>, vector<8x1xf32>
      %c0_12 = arith.constant 0 : index
      %c1 = arith.constant 1 : index
      %19 = vector.load %arg6[%c0_12, %c1] : memref<8x2xf32, #tpu.memory_space<vmem>>, vector<8x1xf32>
      %c0_13 = arith.constant 0 : index
      %c0_14 = arith.constant 0 : index
      %20 = vector.load %arg11[%c0_13, %c0_14] : memref<8x128xf32, #tpu.memory_space<vmem>>, vector<8x128xf32>
      %c0_15 = arith.constant 0 : index
      %c0_16 = arith.constant 0 : index
      %21 = vector.load %arg7[%c0_15, %c0_16] : memref<1x128xf32, #tpu.memory_space<vmem>>, vector<1x128xf32>
      %22 = vector.broadcast %21 : vector<1x128xf32> to vector<8x128xf32>
      %23 = arith.mulf %20, %22 : vector<8x128xf32>
      %c0_17 = arith.constant 0 : index
      %c0_18 = arith.constant 0 : index
      %24 = vector.load %arg8[%c0_17, %c0_18] : memref<1x128xf32, #tpu.memory_space<vmem>>, vector<1x128xf32>
      %25 = vector.broadcast %24 : vector<1x128xf32> to vector<8x128xf32>
      %26 = vector.broadcast %18 : vector<8x1xf32> to vector<8x128xf32>
      %27 = arith.mulf %25, %26 : vector<8x128xf32>
      %28 = arith.addf %23, %27 : vector<8x128xf32>
      %29 = vector.broadcast %19 : vector<8x1xf32> to vector<8x128xf32>
      %30 = arith.addf %28, %29 : vector<8x128xf32>
      %c0_19 = arith.constant 0 : index
      %c0_20 = arith.constant 0 : index
      %31 = vector.load %arg9[%c0_19, %c0_20] : memref<1x128xf32, #tpu.memory_space<vmem>>, vector<1x128xf32>
      %32 = vector.broadcast %31 : vector<1x128xf32> to vector<8x128xf32>
      %33 = arith.addf %30, %32 : vector<8x128xf32>
      %c0_21 = arith.constant 0 : index
      %c0_22 = arith.constant 0 : index
      %34 = vector.load %arg10[%c0_21, %c0_22] : memref<8x128xf32, #tpu.memory_space<vmem>>, vector<8x128xf32>
      tpu.vector_store %arg10[%c0_21, %c0_22], %33 {strides = array<i32>} : memref<8x128xf32, #tpu.memory_space<vmem>>, vector<8x128xf32>,
    } else {
    }
    return
  }
  func.func @transform_0(%arg0: i32, %arg1: i32, %arg2: i32) -> (i32, i32) {
    %c0_i32 = arith.constant 0 : i32
    return %arg0, %arg2 : i32, i32
  }
  func.func @transform_1(%arg0: i32, %arg1: i32, %arg2: i32) -> (i32, i32) {
    %c0_i32 = arith.constant 0 : i32
    return %arg1, %arg2 : i32, i32
  }
  func.func @transform_2(%arg0: i32, %arg1: i32, %arg2: i32) -> (i32, i32) {
    %c0_i32 = arith.constant 0 : i32
    %c0_i32_0 = arith.constant 0 : i32
    %c0_i32_1 = arith.constant 0 : i32
    return %c0_i32, %c0_i32_0 : i32, i32
  }
  func.func @transform_3(%arg0: i32, %arg1: i32, %arg2: i32) -> (i32, i32) {
    %c0_i32 = arith.constant 0 : i32
    %c0_i32_0 = arith.constant 0 : i32
    return %arg0, %c0_i32 : i32, i32
  }
  func.func @transform_4(%arg0: i32, %arg1: i32, %arg2: i32) -> (i32, i32) {
    %c0_i32 = arith.constant 0 : i32
    %c0_i32_0 = arith.constant 0 : i32
    return %c0_i32, %arg1 : i32, i32
  }
  func.func @transform_5(%arg0: i32, %arg1: i32, %arg2: i32) -> (i32, i32) {
    %c0_i32 = arith.constant 0 : i32
    %c0_i32_0 = arith.constant 0 : i32
    return %c0_i32, %arg1 : i32, i32
  }
  func.func @transform_6(%arg0: i32, %arg1: i32, %arg2: i32) -> (i32, i32) {
    %c0_i32 = arith.constant 0 : i32
    %c0_i32_0 = arith.constant 0 : i32
    return %c0_i32, %arg1 : i32, i32
  }
  func.func @transform_7(%arg0: i32, %arg1: i32, %arg2: i32) -> (i32, i32) {
    %c0_i32 = arith.constant 0 : i32
    return %arg0, %arg1 : i32, i32
  }
}

</mosaic_0001>

<bundles_post_ra>
// kernel: _lambda_.1
= control target key start
LH: loop header
LB: loop body
LE: loop exit
PB: predicated region body
PF: predicated region fallthrough
CT: control target
= control target key end

     0   :  { %s1327_s0 = inlined_call_operand.vmem [shape: f32[16,256], index: 0, kind: input, shape index: {}]   ;;  %s1328_s1 = inlined_call_operand.hbm [shape: f32[256,256], index: 1, kind: input, shape index: {}]   ;;  %s1329_s2 = inlined_call_operand.vmem [shape: f32[1,256], index: 2, kind: input, shape index: {}]   ;;  %s1330_s3 = inlined_call_operand.vmem [shape: f32[16,2], index: 3, kind: input, shape index: {}]   ;;  %s1331_s4 = inlined_call_operand.vmem [shape: f32[1,256], index: 4, kind: input, shape index: {}]   ;;  %s1332_s5 = inlined_call_operand.vmem [shape: f32[1,256], index: 5, kind: input, shape index: {}]   ;;  %s1333_s6 = inlined_call_operand.vmem [shape: f32[1,256], index: 6, kind: input, shape index: {}]   ;;  %s1334_s7 = inlined_call_operand.hbm [shape: f32[16,256], index: 7, kind: output, shape index: {}]  }
   0x1   :  { %1346 = sst [smem:[#allocation19_spill]] %s1328_s1 }
   0x2   :  { %1347 = sst [smem:[#allocation20_spill]] %s1329_s2 }
   0x3   :  { %1348 = sst [smem:[#allocation21_spill]] %s1333_s6 }
   0x4   :  { %1349 = sst [smem:[#allocation22_spill]] %s1334_s7 }
   0x5   :  { %12 = vsyncpa [#allocation4], 0 }
   0x6   :  { %14 = vsyncpa [#allocation4 + $0x1], 0 }
   0x7   :  { %15 = vsyncpa [#allocation5], 0 }
   0x8   :  { %17 = vsyncpa [#allocation5 + $0x1], 0  ;;  %s1038_s24 = smov 0   ;;  %s1040_s25 = smov 0  }
   0x9   :  { %s1042_s26 = smov 0   ;;  %s1044_s27 = smov 0  }
   0xa   :  { %s1046_s28 = smov 0   ;;  %s1048_s29 = smov 0  }
   0xb   :  { %s1050_s30 = smov 0   ;;  %s1052_s8 = smov 0  }
   0xc   :  { %s1054_s9 = smov 0   ;;  %s1056_s10 = smov 0  }
   0xd   :  { %s1058_s11 = smov 0   ;;  %s1060_s12 = smov 0  }
   0xe   :  { %s1062_s13 = smov 0  }
   0xf LB: > { %1350 = sst [smem:[#allocation9_spill]] %s942_s24  ;;  %s1335_s14 = sadd.s32 4294967295, %s990_s13   ;;  %s990_s13 = sphi %s1062_s13, %s23_s13   ;;  %s986_s12 = sphi %s1060_s12, %s1382_s12   ;;  %s982_s11 = sphi %s1058_s11, %s1390_s11   ;;  %s978_s10 = sphi %s1056_s10, %s1389_s10   ;;  %s974_s9 = sphi %s1054_s9, %s1379_s9   ;;  %s970_s8 = sphi %s1052_s8, %s1388_s8   ;;  %s966_s30 = sphi %s1050_s30, %s1387_s30   ;;  %s962_s29 = sphi %s1048_s29, %s1378_s29   ;;  %s958_s28 = sphi %s1046_s28, %s1386_s28   ;;  %s954_s27 = sphi %s1044_s27, %s1385_s27   ;;  %s950_s26 = sphi %s1042_s26, %s1376_s26   ;;  %s946_s25 = sphi %s1040_s25, %s1384_s25   ;;  %s942_s24 = sphi %s1038_s24, %s1383_s24  }
  0x10   : > { %1351 = sst [smem:[#allocation10_spill]] %s950_s26  ;;  %s35_s16 = sadd.s32 1, %s978_s10 }
  0x11   : > { %1352 = sst [smem:[#allocation11_spill]] %s962_s29  ;;  %s38_s17 = sadd.s32 1, %s982_s11 }
  0x12   : > { %1353 = sst [smem:[#allocation12_spill]] %s986_s12  ;;  %p36_p0 = scmp.ge.s32.totalorder %s35_s16, 2 }
  0x13   : > { %s42_s18 = sadd.s32 1, %s986_s12  ;;  %s79_s19 = sadd.s32 1, %s962_s29 }
  0x14   : > { %p86_p1 = scmp.ne.s32.totalorder %s962_s29, %s958_s28  ;;  %s1392_s16 = smov (%p36_p0, %s35_s16), 0 }
  0x15   : > { %1354 = sst [smem:[#allocation13_spill]] %s1392_s16  ;;  %s1394_s17 = smov (!%p36_p0, %s38_s17), %s982_s11 }
  0x16   : > { %s75_s20 = ssub.s32 %s978_s10, %s1392_s16  ;;  %p87_p2 = scmp.eq.s32.totalorder %s990_s13, 0 }
  0x17   : > { %p40_p3 = scmp.ge.s32.totalorder %s1394_s17, 2  ;;  %p92_p4 = scmp.ne.s32.totalorder %s958_s28, %s954_s27 }
  0x18   : > { %p1119_p5 = por %p87_p2, %p86_p1  ;;  %p93_p6 = scmp.eq.s32.totalorder %s1335_s14, 0 }
  0x19   : > { %s1396_s17 = smov (%p40_p3, %s1394_s17), 0  ;;  %s1398_s18 = smov (!%p40_p3, %s42_s18), %s986_s12 }
  0x1a   : > { %1356 = sst [smem:[#allocation14_spill]] %s1396_s17  ;;  %s74_s22 = ssub.s32 %s982_s11, %s1396_s17 }
  0x1b   : > { %p1130_p7 = por %p93_p6, %p92_p4  ;;  %p44_p8 = scmp.ge.s32.totalorder %s1398_s18, 2 }
  0x1c   : > { %s76_s27 = sor.u32 %s75_s20, %s74_s22  ;;  %s232_s15 = sadd.s32 1, %s950_s26 }
  0x1d   : > { %p77_p9 = scmp.eq.s32.totalorder %s76_s27, 0  ;;  %s1400_s18 = smov (%p44_p8, %s1398_s18), 0 }
  0x1e   : > { %1358 = sst [smem:[#allocation15_spill]] %s1400_s18  ;;  %s227_s16 = ssub.s32 %s986_s12, %s1400_s18 }
  0x1f   : > { %s1138_s14 = scalar_select %p77_p9, %s962_s29, %s79_s19  }
  0x20   : > { %p242_p10 = scmp.ne.s32.totalorder %s950_s26, %s946_s25  ;;  %s229_s17 = sor.u32 %s227_s16, %s74_s22 }
  0x21   : > { %1359 = sst [smem:[#allocation16_spill]] %s1138_s14  ;;  %s1360_s7 = sadd.s32 4294967295, %s990_s13  }
  0x22   : > { %p243_p11 = scmp.eq.s32.totalorder %s1360_s7, 7  ;;  %p230_p12 = scmp.eq.s32.totalorder %s229_s17, 0 }
  0x23   : > { %p248_p13 = scmp.ne.s32.totalorder %s946_s25, %s942_s24  ;;  %s1362_s27 = sadd.s32 4294967294, %s990_s13  }
  0x24   : > { %p1148_p0 = por %p243_p11, %p242_p10  ;;  %p249_p1 = scmp.eq.s32.totalorder %s1362_s27, 7 }
  0x25   : > { %s1155_s2 = scalar_select %p230_p12, %s950_s26, %s232_s15  }
  0x26   : > { %p1157_p2 = por %p249_p1, %p248_p13  ;;  %p704_p3 = scmp.lt.s32.totalorder %s990_s13, 8 }
  0x27   : > { %1363 = sst [smem:[#allocation17_spill]] %s1155_s2  ;;  %s283_s19 = sand.u32 1, %s962_s29  }
  0x28   : > { %s1364_s6 = scalar_select %p1157_p2, 1, 0 }
  0x29   : > { %s673_s16 = sshll.u32 %s283_s19, 7  ;;  %s691_s7 = sshll.u32 %s982_s11, 5 }
  0x2a   : > { %1365 = sst [smem:[#allocation18_spill]] %s1364_s6  ;;  %s292_s17 = sadd.s32 %s978_s10, %s691_s7 }
  0x2b   : > { %s287_s22 = scalar_lea.vmem [#allocation3], %s673_s16  ;;  %s676_s12 = sshll.u32 %s292_s17, 3 }
  0x2c   : > { %s297_s18 = sshll.u32 %s287_s22, 4  ;;  %s1366_s1 = sld [smem:[#allocation19_spill]]  ;;  %s298_s18 = int_to_ptr.vmem [resolvable:$true] %s297_s18 }
  0x2d   : > { %p697_p4 = pnand %p704_p3, %p1119_p5  ;;  %s284_s2 = scalar_lea.sflag [#allocation4], %s283_s19 }
  0x2e   : > { %s992_s26 = smov 256   ;;  %s993_s29 = smov 128  }
  0x2f   : > { %s994_s6 = smov 8   ;;  %p677_p6 = scmp.ge.s32.totalorder %s990_s13, 1 }
  0x30   : > { %p330_p8 = scmp.lt.s32.totalorder %s990_s13, 9 }
  0x32   : > { %s294_s15 = scalar_lea.hbm %s1366_s1, %s676_s12  ;;  %p331_p9 = pnand %p677_p6, %p330_p8 }
  0x33   : > { %s295_s27 = sshll.u32 %s294_s15, 4  ;;  %s336_s16 = sand.u32 (!%p331_p9), 1, %s958_s28   ;;  %s296_s27 = int_to_ptr.hbm [resolvable:$true] %s295_s27 }
  0x34   : > { %699 = dma.hbm_to_vmem [thread:$0]  (!%p697_p4), %s296_s27, 2048, %s298_s18, %s284_s2, %s992_s26, %s993_s29, %s994_s6  }
  0x35   : > { %334 = sbr.rel (%p331_p9) target bundleno = 421 (0x1a5), region = 48  ;;  %s678_s7 = sshll.u32 (!%p331_p9), %s336_s16, 7 }
  0x36   : > { %s337_s17 = scalar_lea.sflag (!%p331_p9), [#allocation4], %s336_s16  ;;  %s1173_s24 = scalar_lea.vmem (!%p331_p9), [#allocation3], %s678_s7 }
  0x3a   : > { %933 = dma.done.wait (%p1130_p7), %s337_s17, 2048  }
  0x3b   : > { %935 = vsyncadd (%p1130_p7), %s337_s17, 4294965248  ;;  %s1345_s2 = sand.u32 1, %s946_s25   ;;  %p393_p5 = scmp.lt.s32.totalorder %s974_s9, 1 }
  0x3c   : > { %s1183_s6 = sshll.u32 %s1345_s2, 3  ;;  %p395_p10 = scmp.lt.s32.totalorder %s966_s30, 1 }
  0x3d   : > { %p406_p11 = scmp.lt.s32.totalorder %s970_s8, 1  ;;  %s1367_s23 = sld [smem:[#allocation21_spill]] }
  0x3e   : > { %s394_s26 = scalar_select %p393_p5, %s974_s9, 1 }
  0x3f   : > { %s396_s29 = scalar_select %p395_p10, %s966_s30, 1 }
  0x40   : > { %s680_s12 = sshll.u32 %s394_s26, 1  ;;  %s682_s14 = sshll.u32 %s394_s26, 3 }
  0x41   : > { %s398_s18 = sadd.s32 %s680_s12, %s396_s29  ;;  %s1192_s19 = scalar_lea.vmem %s1330_s3, %s682_s14 }
  0x42   : > { %s681_s22 = sshll.u32 %s398_s18, 3  ;;  %s392_s15 = scalar_lea.vmem [#allocation6], %s1183_s6 }
  0x43   : > { %s1197_s16 = scalar_lea.vmem %s1327_s0, %s681_s22  ;;  %p683_p7 = scmp.ne.s32.totalorder %s966_s30, 0 }
  0x44   : > { %s1200_s7 = scalar_select %p406_p11, %s970_s8, 1 }
  0x45   : > { %418 = sbr.rel (%p683_p7) target bundleno = 76 (0x4c), region = 56 }
  0x46   : > { %s408_s26 = scalar_lea.vmem %s1331_s4, %s1200_s7  ;;  %s411_s14 = scalar_lea.vmem %s1332_s5, %s1200_s7 }
  0x47   : > { %s414_s1 = scalar_lea.vmem %s1367_s23, %s1200_s7 }
  0x4a   : > { %v995_v0 = vmov 0.0  }
  0x4b   : > { %419 = vst [vmem:[#allocation2] sm:$0xff] %v995_v0 }
  0x4c PF: > { %v446_v1 = vld [vmem:[%s1173_s24 + $0x78] sm:$0xff]  ;;  %s684_s2 = sshll.u32 %s966_s30, 7  ;;  %v445_v2 = vld [vmem:[%s1173_s24 + $0x70] sm:$0xff]  ;;  %s1368_s29 = sld [smem:[#allocation20_spill]]  ;;  %v444_v3 = vld [vmem:[%s1173_s24 + $0x68] sm:$0xff] }
  0x4d   : > { %447 = vmatpush.xpose.msra.mxu0 %v446_v1  ;;  %s1218_s22 = sshra.s32 %s684_s2, 7  ;;  %v443_v4 = vld [vmem:[%s1173_s24 + $0x60] sm:$0xff]  ;;  %v442_v5 = vld [vmem:[%s1173_s24 + $0x58] sm:$0xff]  ;;  %v441_v6 = vld [vmem:[%s1173_s24 + $0x50] sm:$0xff]  ;;  %p685_p12 = scmp.ne.s32.totalorder %s966_s30, 1 }
  0x4e   : > { %v440_v7 = vld [vmem:[%s1173_s24 + $0x48] sm:$0xff]  ;;  %v439_v8 = vld [vmem:[%s1173_s24 + $0x40] sm:$0xff]  ;;  %v438_v9 = vld [vmem:[%s1173_s24 + $0x38] sm:$0xff] }
  0x4f   : > { %v437_v10 = vld [vmem:[%s1173_s24 + $0x30] sm:$0xff]  ;;  %v436_v11 = vld [vmem:[%s1173_s24 + $0x28] sm:$0xff]  ;;  %v435_v12 = vld [vmem:[%s1173_s24 + $0x20] sm:$0xff] }
  0x50   : > { %v434_v13 = vld [vmem:[%s1173_s24 + $0x18] sm:$0xff]  ;;  %v433_v14 = vld [vmem:[%s1173_s24 + $0x10] sm:$0xff]  ;;  %v432_v15 = vld [vmem:[%s1173_s24 + $0x8] sm:$0xff] }
  0x51   : > { %448 = vmatpush.xpose.msra.mxu0 %v445_v2  ;;  %v420_v17 = vld [vmem:[%s1197_s16] sm:$0xff]  ;;  %v431_v18 = vld [vmem:[%s1173_s24] sm:$0xff] }
  0x52   : > { %s424_s12 = scalar_lea.vmem %s1368_s29, %s1218_s22  ;;  %v430_v20 = vld [vmem:[#allocation2] sm:$0xff] }
  0x53   : > { %v816_v16 = vld [vmem:[%s424_s12] ss:$0 sm:$0xff] }
  0x54   : > { %v429_v19 = vmul.f32 %v816_v16, %v420_v17 }
  0x55   : > { %449 = vmatpush.xpose.msra.mxu0 %v444_v3 }
  0x59   : > { %450 = vmatpush.xpose.msra.mxu0 %v443_v4 }
  0x5d   : > { %451 = vmatpush.xpose.msra.mxu0 %v442_v5 }
  0x61   : > { %452 = vmatpush.xpose.msra.mxu0 %v441_v6 }
  0x65   : > { %453 = vmatpush.xpose.msra.mxu0 %v440_v7 }
  0x69   : > { %454 = vmatpush.xpose.msra.mxu0 %v439_v8 }
  0x6d   : > { %455 = vmatpush.xpose.msra.mxu0 %v438_v9 }
  0x71   : > { %456 = vmatpush.xpose.msra.mxu0 %v437_v10 }
  0x75   : > { %457 = vmatpush.xpose.msra.mxu0 %v436_v11 }
  0x79   : > { %458 = vmatpush.xpose.msra.mxu0 %v435_v12 }
  0x7d   : > { %459 = vmatpush.xpose.msra.mxu0 %v434_v13 }
  0x81   : > { %460 = vmatpush.xpose.msra.mxu0 %v433_v14 }
  0x85   : > { %461 = vmatpush.xpose.msra.mxu0 %v432_v15 }
  0x89   : > { %462 = vmatpush.xpose.msra.mxu0 %v431_v18 }
  0x8c   : > { %463 = vmatmul.f32.vlgmr.msra.gmra.mxu0 %v429_v19 }
 0x108   : > { %472 = sbr.rel (%p685_p12) target bundleno = 400 (0x190), region = 60 }
 0x109   : > { %v464_v21 = vpop.f32.mrf.mxu0 }
 0x10a   : > { %v467_v22 = vadd.f32 %v464_v21, %v430_v20 }
 0x10c   : > { %468 = vst [vmem:[#allocation2] sm:$0xff] %v467_v22 }
 0x10d   : > { %v473_v23 = vld [vmem:[%s1192_s19] sm:$0xff]  ;;  %v996_v24 = vmov 0   ;;  %v997_v25 = vmov 1  }
 0x10e   : > { %817 = vset.pattern.permute.xlu0 %v996_v24  ;;  %v819_v26 = vld [vmem:[%s411_s14] ss:$0 sm:$0xff] }
 0x10f   : > { %486 = vperm.xlu0 %817, %v473_v23   ;;  %v820_v28 = vld [vmem:[%s408_s26] ss:$0 sm:$0xff] }
 0x110   : > { %v821_v33 = vld [vmem:[%s414_s1] ss:$0 sm:$0xff] }
 0x113   : > { %v474_v29 = vld [vmem:[#allocation2] sm:$0xff] }
 0x114   : > { %v479_v31 = vmul.f32 %v820_v28, %v474_v29 }
 0x117   : > { %818 = vset.pattern.permute.xlu0 %v997_v25 }
 0x118   : > { %492 = vperm.xlu0 %818, %v473_v23  }
 0x181   : > { %v487_v27 = vpop.permute.xlu0 %486 }
 0x182   : > { %v489_v30 = vmul.f32 %v819_v26, %v487_v27 }
 0x184   : > { %v490_v32 = vadd.f32 %v489_v30, %v479_v31 }
 0x18a   : > { %v493_v34 = vpop.permute.xlu0 %492 }
 0x18b   : > { %v495_v35 = vadd.f32 %v493_v34, %v490_v32 }
 0x18d   : > { %v500_v36 = vadd.f32 %v821_v33, %v495_v35 }
 0x18f   : > { %501 = vst [vmem:[%s392_s15] sm:$0xff] %v500_v36 }
 0x190 PF: > { %s687_s26 = sshll.u32 %s974_s9, 1  ;;  %s517_s2 = sshll.u32 %s392_s15, 4  ;;  %s518_s2 = int_to_ptr.vmem [resolvable:$true] %s517_s2 }
 0x191   : > { %s513_s14 = sadd.s32 %s970_s8, %s687_s26  ;;  %s1370_s7 = sld [smem:[#allocation22_spill]] }
 0x192   : > { %s688_s22 = sshll.u32 %s513_s14, 3  ;;  %s1371_s12 = sand.u32 1, %s946_s25  }
 0x193   : > { %s503_s24 = scalar_lea.sflag [#allocation5], %s1371_s12 }
 0x197   : > { %s515_s1 = scalar_lea.hbm %s1370_s7, %s688_s22  ;;  %s872_s6 = scalar_lea.hbm %s1370_s7, 32 }
 0x198   : > { %s519_s29 = sshll.u32 %s515_s1, 4  ;;  %s520_s29 = int_to_ptr.hbm [resolvable:$true] %s519_s29 }
 0x199   : > { %s866_s16 = sshra.s32 %s520_s29, 4  ;;  %s867_s16 = int_to_ptr.hbm [resolvable:$true] %s866_s16 }
 0x19a   : > { %s868_s30 = scalar_lea.hbm %s867_s16, 8  ;;  %p873_p4 = scmp.lt.s32.totalorder %s867_s16, %s1370_s7 }
 0x19b   : > { %p869_p13 = scmp.ne.s32.totalorder %s867_s16, %s868_s30  ;;  %p874_p6 = scmp.lt.s32.totalorder %s872_s6, %s868_s30 }
 0x19d   : > { %p870_p1 = pnand %p869_p13, %p1148_p0  ;;  %p875_p8 = por %p874_p6, %p873_p4 }
 0x19f   : > { %p871_p3 = pneg %p870_p1 }
 0x1a1   : > { %p876_p9 = pnand %p875_p8, %p871_p3 }
 0x1a3   : > { %879 = shalt.err (!%p876_p9)
}
 0x1a4   : > { %694 = dma.vmem_to_hbm [thread:$0]  (%p1148_p0), %s518_s2, 128, %s520_s29, %s503_s24  }
 0x1a5 PF: > { %s1372_s19 = sld [smem:[#allocation9_spill]]  ;;  %p705_p5 = scmp.ge.s32.totalorder %s990_s13, 2 }
 0x1a7   : > { %p701_p10 = pnand %p705_p5, %p1157_p2 }
 0x1a9   : > { %p702_p11 = pneg %p701_p10 }
 0x1ab   : > { %s531_s23 = sand.u32 1, %s1372_s19  }
 0x1ac   : > { %s532_s26 = scalar_lea.sflag [#allocation5], %s531_s23 }
 0x1ad   : > { %937 = dma.done.wait (%p702_p11), %s532_s26, 128  }
 0x1ae   : > { %939 = vsyncadd (%p702_p11), %s532_s26, 4294967168  ;;  %s23_s13 = sadd.s32 1, %s990_s13   ;;  %s1375_s20 = sld [smem:[#allocation10_spill]] }
 0x1af   : > { %p1283_p7 = scmp.ge.s32.totalorder %s23_s13, 10   ;;  %s1376_s26 = sld [smem:[#allocation17_spill]] }
 0x1b0   : > { %s1377_s2 = sld [smem:[#allocation11_spill]]  ;;  %s1383_s24 = smov %s946_s25 }
 0x1b1   : > { %s1378_s29 = sld [smem:[#allocation16_spill]]  ;;  %s1385_s27 = smov %s958_s28 }
 0x1b2   : > { %s1379_s9 = sld [smem:[#allocation12_spill]]  ;;  %s1387_s30 = smov %s978_s10 }
 0x1b3   : > { %s1380_s22 = sld [smem:[#allocation13_spill]]  ;;  %s1388_s8 = smov %s982_s11 }
 0x1b4   : > { %s1381_s17 = sld [smem:[#allocation14_spill]]  ;;  %s1384_s25 = smov %s1375_s20 }
 0x1b5   : > { %s1382_s12 = sld [smem:[#allocation15_spill]] }
 0x1b6   : > { %s1386_s28 = smov %s1377_s2  ;;  %22 = sbr.rel (!%p1283_p7) target bundleno = 15 (0xf), region = 117 }
 0x1b9   : > { %s1389_s10 = smov %s1380_s22 }
 0x1ba   : > { %s1390_s11 = smov %s1381_s17 }
 0x1bb   :  { %538 = vsyncpa [#allocation4], 1 }
 0x1bc   :  { %540 = vsyncpa [#allocation4 + $0x1], 1 }
 0x1bd   :  { %541 = vsyncpa [#allocation5], 1 }
 0x1be   :  { %543 = vsyncpa [#allocation5 + $0x1], 1 }

</bundles_post_ra>
